<compile_context>
chip_gen: v7x
topology: tpu7x:2x2x1
jax: 0.10.0
libtpu: 0.0.40
codegen_flags: <defaults>
</compile_context>

<pallas_src>
import jax
import jax.numpy as jnp
import numpy as np
from jax.experimental import pallas as pl
from jax.experimental.pallas import tpu as pltpu


def _round_up(n, m):
    return ((n + m - 1) // m) * m


def _cdiv(a, b):
    return (a + b - 1) // b


def _vmem_capacity_bytes():
    """Physical VMEM per TensorCore; conservative 64 MiB default (v7x)."""
    try:
        info = pltpu.get_tpu_info()
        cap = int(getattr(info, "vmem_capacity_bytes", 64 << 20))
        return cap if cap > 0 else (64 << 20)
    except Exception:
        return 64 << 20


def _need_bytes(tm, tdff, d_model_p, x_i, w_i, o_i, use_acc):
    """VMEM footprint of one tile configuration (double-buffered inputs/outputs)."""
    need = (2 * tm * d_model_p * x_i          # x row tile
            + 2 * d_model_p * tdff * w_i      # w1 block
            + 2 * tdff * w_i                  # b1 block
            + 2 * tdff * d_model_p * w_i      # w2 block
            + 2 * d_model_p * w_i             # b2 block
            + 2 * tm * d_model_p * o_i        # output tile
            + tm * tdff * 4)                  # fc1 intermediate h (f32, lives in VMEM)
    if use_acc:
        need += tm * d_model_p * 4            # f32 accumulator scratch
    need += 2 << 20                           # Mosaic internal scratch headroom
    return need


# ----------------------------------------------------------------------------
# Kernels
# ----------------------------------------------------------------------------
def ffn_kernel_f32_out(x_ref, w1_ref, b1_ref, w2_ref, b2_ref, o_ref):
    """One (row-tile i, dff-tile j) step; accumulates fc2 partials directly in o_ref (f32)."""
    j = pl.program_id(1)

    @pl.when(j == 0)
    def _init():
        o_ref[...] = jnp.zeros_like(o_ref)

    # h_blk = relu(x_tile @ w1_blk + b1_blk)  -> (tm, tdff), f32 accumulation on the MXU.
    h = jnp.dot(x_ref[...], w1_ref[...], preferred_element_type=jnp.float32)
    h = jnp.maximum(h + b1_ref[...].astype(jnp.float32), 0.0)

    # Partial contraction over dff. (Deliberate downcast of h to the weight
    # dtype when weights are bf16 -- documented precision trade-off.)
    o_ref[...] += jnp.dot(h.astype(w2_ref.dtype), w2_ref[...],
                          preferred_element_type=jnp.float32)

    @pl.when(j == pl.num_programs(1) - 1)
    def _finalize():
        o_ref[...] += b2_ref[...].astype(jnp.float32)


def ffn_kernel_acc(x_ref, w1_ref, b1_ref, w2_ref, b2_ref, o_ref, acc_ref):
    """Variant with an f32 VMEM accumulator for non-f32 output dtypes (e.g. bf16)."""
    j = pl.program_id(1)

    @pl.when(j == 0)
    def _init():
        acc_ref[...] = jnp.zeros_like(acc_ref)

    h = jnp.dot(x_ref[...], w1_ref[...], preferred_element_type=jnp.float32)
    h = jnp.maximum(h + b1_ref[...].astype(jnp.float32), 0.0)
    acc_ref[...] += jnp.dot(h.astype(w2_ref.dtype), w2_ref[...],
                            preferred_element_type=jnp.float32)

    @pl.when(j == pl.num_programs(1) - 1)
    def _finalize():
        o_ref[...] = (acc_ref[...] + b2_ref[...].astype(jnp.float32)
                      ).astype(o_ref.dtype)


# ----------------------------------------------------------------------------
# Wrapper
# ----------------------------------------------------------------------------
def feed_forward_network(x, w1, b1, w2, b2, *, tm=1024,
                         compute_dtype=None, vmem_limit_bytes=None):
    """fc2(relu(fc1(x))).

    x: (batch, seq, d_model); w1: (d_model, dff); b1: (dff,);
    w2: (dff, d_model); b2: (d_model,).
    compute_dtype=jnp.bfloat16 casts x/w1/w2 before the kernel (recommended on
    v5e); accumulation stays f32 either way.
    """
    batch, seq, d_model = x.shape
    dff = w1.shape[1]
    assert w1.shape == (d_model, dff) and w2.shape == (dff, d_model)
    assert b1.shape == (dff,) and b2.shape == (d_model,)

    if compute_dtype is not None:
        x = x.astype(compute_dtype)
        w1 = w1.astype(compute_dtype)
        w2 = w2.astype(compute_dtype)

    out_dtype = x.dtype
    use_acc = jnp.dtype(out_dtype) != jnp.dtype(jnp.float32)
    M = batch * seq

    x_i = jnp.dtype(x.dtype).itemsize
    w_i = jnp.dtype(w1.dtype).itemsize
    o_i = jnp.dtype(out_dtype).itemsize

    # ---- lane-aligned padded dims ------------------------------------------
    d_model_p = _round_up(d_model, 128)   # lane-dense output / matmul N
    dff_p = _round_up(dff, 256)           # 256-granular for v6e/v7x 2x256x256 MXUs

    # ---- VMEM budget (capped below physical capacity; 56 MiB on v7x) -------
    vmem_cap = _vmem_capacity_bytes()
    cap = (vmem_cap * 7) // 8
    if vmem_limit_bytes is not None:
        cap = min(cap, int(vmem_limit_bytes))

    # ---- tile selection ------------------------------------------------------
    tm_req = max(16, min(tm, _round_up(M, 16)))
    # Feed both v7x TensorCores (parallel i axis) when there is enough work.
    if M >= 256:
        tm_req = min(tm_req, _round_up(_cdiv(M, 2), 16))
    tm_req = _round_up(tm_req, 16)

    # Prefer full weight residency (tdff == dff_p -> weights DMA'd once per call),
    # then the largest row tile that fits the VMEM budget.
    tdff_cands = [dff_p] + [t for t in (2048, 1024, 512, 256) if t < dff_p]
    tm_cands = sorted({_round_up(min(t, tm_req), 16)
                       for t in (tm_req, 1024, 768, 512, 256, 128, 16)},
                      reverse=True)

    tm_sel, tdff_sel = tm_cands[-1], tdff_cands[-1]   # smallest-footprint fallback
    found = False
    for td in tdff_cands:
        for t in tm_cands:
            if _need_bytes(t, td, d_model_p, x_i, w_i, o_i, use_acc) <= cap:
                tm_sel, tdff_sel, found = t, td, True
                break
        if found:
            break
    tm, tdff = tm_sel, tdff_sel

    dff_p = _round_up(dff_p, tdff)        # dff blocked evenly by tdff
    M_p = _round_up(M, tm)
    grid = (M_p // tm, dff_p // tdff)

    if vmem_limit_bytes is None:
        need = _need_bytes(tm, tdff, d_model_p, x_i, w_i, o_i, use_acc)
        vmem_limit_bytes = int(min(max(need * 5 // 4, 32 << 20), cap))

    # ---- zero-pad operands (padding is mathematically inert) ----------------
    # Pads are guarded: no-ops when shapes are already aligned. For production,
    # pre-transpose/pre-pad the weights once at model init so only x is touched
    # per call.
    x2d = x.reshape(M, d_model)
    if M_p != M or d_model_p != d_model:
        x2d = jnp.pad(x2d, ((0, M_p - M), (0, d_model_p - d_model)))
    w1p = w1 if (d_model_p == d_model and dff_p == dff) else jnp.pad(
        w1, ((0, d_model_p - d_model), (0, dff_p - dff)))
    w2p = w2 if (dff_p == dff and d_model_p == d_model) else jnp.pad(
        w2, ((0, dff_p - dff), (0, d_model_p - d_model)))
    b1p = (b1 if dff_p == dff else jnp.pad(b1, (0, dff_p - dff))).reshape(1, dff_p)
    b2p = (b2 if d_model_p == d_model else jnp.pad(b2, (0, d_model_p - d_model))
           ).reshape(1, d_model_p)

    # ---- cost estimate -------------------------------------------------------
    flops = 4 * M * d_model * dff  # two matmuls, 2 flops per MAC
    weight_fetches = 1 if grid[1] == 1 else grid[0]   # resident vs. streamed per row tile
    bytes_accessed = int(
        M_p * d_model_p * x_i
        + weight_fetches * (d_model_p * dff_p + dff_p * d_model_p) * w_i
        + (dff_p + d_model_p) * w_i
        + M_p * d_model_p * o_i)

    kernel = ffn_kernel_acc if use_acc else ffn_kernel_f32_out
    scratch = ([pltpu.VMEM((tm, d_model_p), jnp.float32)] if use_acc else [])

    out2d = pl.pallas_call(
        kernel,
        out_shape=jax.ShapeDtypeStruct((M_p, d_model_p), out_dtype),
        grid=grid,
        in_specs=[
            pl.BlockSpec((tm, d_model_p), lambda i, j: (i, 0)),    # x row tile
            pl.BlockSpec((d_model_p, tdff), lambda i, j: (0, j)),  # w1 block
            pl.BlockSpec((1, tdff), lambda i, j: (0, j)),          # b1 block
            pl.BlockSpec((tdff, d_model_p), lambda i, j: (j, 0)),  # w2 block
            pl.BlockSpec((1, d_model_p), lambda i, j: (0, 0)),     # b2
        ],
        out_specs=pl.BlockSpec((tm, d_model_p), lambda i, j: (i, 0)),
        scratch_shapes=scratch,
        compiler_params=pltpu.CompilerParams(
            dimension_semantics=("parallel", "arbitrary"),
            vmem_limit_bytes=int(vmem_limit_bytes)),
        cost_estimate=pl.CostEstimate(flops=flops, transcendentals=0,
                                      bytes_accessed=bytes_accessed),
    )(x2d, w1p, b1p, w2p, b2p)

    return out2d[:M, :d_model].reshape(batch, seq, d_model)


if __name__ == "__main__":
    # Small shapes consistent with the module's forward.
    batch, seq, d_model, dff = 2, 8, 32, 64

    key = jax.random.PRNGKey(0)
    kx, kw1, kb1, kw2, kb2 = jax.random.split(key, 5)

    x = jax.random.normal(kx, (batch, seq, d_model), dtype=jnp.float32)

    # PyTorch nn.Linear keeps weight as (out, in); kernel wants (in, out).
    w1_t = jax.random.normal(kw1, (dff, d_model), dtype=jnp.float32) * 0.1  # fc1.weight
    b1 = jax.random.normal(kb1, (dff,), dtype=jnp.float32) * 0.1            # fc1.bias
    w2_t = jax.random.normal(kw2, (d_model, dff), dtype=jnp.float32) * 0.1  # fc2.weight
    b2 = jax.random.normal(kb2, (d_model,), dtype=jnp.float32) * 0.1        # fc2.bias

    w1 = w1_t.T  # (d_model, dff)
    w2 = w2_t.T  # (dff, d_model)

    out = feed_forward_network(x, w1, b1, w2, b2)
    out = jax.block_until_ready(out)

    # Pure-JAX reference (same semantics as the PyTorch module).
    ref = jnp.maximum(x @ w1 + b1, 0.0) @ w2 + b2
    np.testing.assert_allclose(np.asarray(out), np.asarray(ref),
                               rtol=1e-5, atol=1e-5)

    print("KERNEL_OK")
</pallas_src>

<mosaic_0001>
module attributes {stable_mosaic.version = 11 : i64} {
  func.func @ffn_kernel_f32_out(%arg0: i32, %arg1: i32, %arg2: memref<16x128xf32, #tpu.memory_space<vmem>>, %arg3: memref<128x256xf32, #tpu.memory_space<vmem>>, %arg4: memref<1x256xf32, #tpu.memory_space<vmem>>, %arg5: memref<256x128xf32, #tpu.memory_space<vmem>>, %arg6: memref<1x128xf32, #tpu.memory_space<vmem>>, %arg7: memref<16x128xf32, #tpu.memory_space<vmem>>) attributes {dimension_semantics = [#tpu.dimension_semantics<parallel>, #tpu.dimension_semantics<arbitrary>], iteration_bounds = array<i64: 1, 1>, scalar_prefetch = 0 : i64, scratch_operands = 0 : i64, tpu.core_type = #tpu.core_type<tc>, window_params = [{transform_indices = @transform_0, window_bounds = array<i64: 16, 128>}, {transform_indices = @transform_1, window_bounds = array<i64: 128, 256>}, {transform_indices = @transform_2, window_bounds = array<i64: 1, 256>}, {transform_indices = @transform_3, window_bounds = array<i64: 256, 128>}, {pipeline_mode = #tpu.pipeline_mode<synchronous>, transform_indices = @transform_4, window_bounds = array<i64: 1, 128>}, {transform_indices = @transform_5, window_bounds = array<i64: 16, 128>}]} {
    %c0_i32 = arith.constant 0 : i32
    %0 = arith.cmpi eq, %arg1, %c0_i32 : i32
    %1 = arith.extui %0 : i1 to i32
    %c0_i32_0 = arith.constant 0 : i32
    %2 = arith.cmpi ne, %1, %c0_i32_0 : i32
    scf.if %2 {
      %cst_16 = arith.constant 0.000000e+00 : f32
      %19 = vector.broadcast %cst_16 : f32 to vector<16x128xf32>
      %c0_17 = arith.constant 0 : index
      %c0_18 = arith.constant 0 : index
      %20 = vector.load %arg7[%c0_17, %c0_18] : memref<16x128xf32, #tpu.memory_space<vmem>>, vector<16x128xf32>
      tpu.vector_store %arg7[%c0_17, %c0_18], %19 {strides = array<i32>} : memref<16x128xf32, #tpu.memory_space<vmem>>, vector<16x128xf32>,
    } else {
    }
    %c0 = arith.constant 0 : index
    %c0_1 = arith.constant 0 : index
    %3 = vector.load %arg2[%c0, %c0_1] : memref<16x128xf32, #tpu.memory_space<vmem>>, vector<16x128xf32>
    %c0_2 = arith.constant 0 : index
    %c0_3 = arith.constant 0 : index
    %4 = vector.load %arg3[%c0_2, %c0_3] : memref<128x256xf32, #tpu.memory_space<vmem>>, vector<128x256xf32>
    %cst = arith.constant dense<0.000000e+00> : vector<16x256xf32>
    %5 = tpu.matmul %3, %4, %cst {dimension_numbers = #tpu.dot_dimension_numbers<[1], [0], [0], [1], [0, 0, 1, 1], [], []>} : vector<16x128xf32>, vector<128x256xf32>, vector<16x256xf32> -> vector<16x256xf32>
    %c0_4 = arith.constant 0 : index
    %c0_5 = arith.constant 0 : index
    %6 = vector.load %arg4[%c0_4, %c0_5] : memref<1x256xf32, #tpu.memory_space<vmem>>, vector<1x256xf32>
    %7 = vector.broadcast %6 : vector<1x256xf32> to vector<16x256xf32>
    %8 = arith.addf %5, %7 : vector<16x256xf32>
    %cst_6 = arith.constant 0.000000e+00 : f32
    %9 = vector.broadcast %cst_6 : f32 to vector<16x256xf32>
    %10 = arith.maximumf %8, %9 : vector<16x256xf32>
    %c0_7 = arith.constant 0 : index
    %c0_8 = arith.constant 0 : index
    %11 = vector.load %arg7[%c0_7, %c0_8] : memref<16x128xf32, #tpu.memory_space<vmem>>, vector<16x128xf32>
    %c0_9 = arith.constant 0 : index
    %c0_10 = arith.constant 0 : index
    %12 = vector.load %arg5[%c0_9, %c0_10] : memref<256x128xf32, #tpu.memory_space<vmem>>, vector<256x128xf32>
    %cst_11 = arith.constant dense<0.000000e+00> : vector<16x128xf32>
    %13 = tpu.matmul %10, %12, %cst_11 {dimension_numbers = #tpu.dot_dimension_numbers<[1], [0], [0], [1], [0, 0, 1, 1], [], []>} : vector<16x256xf32>, vector<256x128xf32>, vector<16x128xf32> -> vector<16x128xf32>
    %14 = arith.addf %11, %13 : vector<16x128xf32>
    %c0_12 = arith.constant 0 : index
    %c0_13 = arith.constant 0 : index
    %15 = vector.load %arg7[%c0_12, %c0_13] : memref<16x128xf32, #tpu.memory_space<vmem>>, vector<16x128xf32>
    tpu.vector_store %arg7[%c0_12, %c0_13], %14 {strides = array<i32>} : memref<16x128xf32, #tpu.memory_space<vmem>>, vector<16x128xf32>,
    %c0_i32_14 = arith.constant 0 : i32
    %16 = arith.cmpi eq, %arg1, %c0_i32_14 : i32
    %17 = arith.extui %16 : i1 to i32
    %c0_i32_15 = arith.constant 0 : i32
    %18 = arith.cmpi ne, %17, %c0_i32_15 : i32
    scf.if %18 {
      %c0_16 = arith.constant 0 : index
      %c0_17 = arith.constant 0 : index
      %19 = vector.load %arg7[%c0_16, %c0_17] : memref<16x128xf32, #tpu.memory_space<vmem>>, vector<16x128xf32>
      %c0_18 = arith.constant 0 : index
      %c0_19 = arith.constant 0 : index
      %20 = vector.load %arg6[%c0_18, %c0_19] : memref<1x128xf32, #tpu.memory_space<vmem>>, vector<1x128xf32>
      %21 = vector.broadcast %20 : vector<1x128xf32> to vector<16x128xf32>
      %22 = arith.addf %19, %21 : vector<16x128xf32>
      %c0_20 = arith.constant 0 : index
      %c0_21 = arith.constant 0 : index
      %23 = vector.load %arg7[%c0_20, %c0_21] : memref<16x128xf32, #tpu.memory_space<vmem>>, vector<16x128xf32>
      tpu.vector_store %arg7[%c0_20, %c0_21], %22 {strides = array<i32>} : memref<16x128xf32, #tpu.memory_space<vmem>>, vector<16x128xf32>,
    } else {
    }
    return
  }
  func.func @transform_0(%arg0: i32, %arg1: i32) -> (i32, i32) {
    %c0_i32 = arith.constant 0 : i32
    %c0_i32_0 = arith.constant 0 : i32
    return %arg0, %c0_i32 : i32, i32
  }
  func.func @transform_1(%arg0: i32, %arg1: i32) -> (i32, i32) {
    %c0_i32 = arith.constant 0 : i32
    %c0_i32_0 = arith.constant 0 : i32
    return %c0_i32, %arg1 : i32, i32
  }
  func.func @transform_2(%arg0: i32, %arg1: i32) -> (i32, i32) {
    %c0_i32 = arith.constant 0 : i32
    %c0_i32_0 = arith.constant 0 : i32
    return %c0_i32, %arg1 : i32, i32
  }
  func.func @transform_3(%arg0: i32, %arg1: i32) -> (i32, i32) {
    %c0_i32 = arith.constant 0 : i32
    %c0_i32_0 = arith.constant 0 : i32
    return %arg1, %c0_i32 : i32, i32
  }
  func.func @transform_4(%arg0: i32, %arg1: i32) -> (i32, i32) {
    %c0_i32 = arith.constant 0 : i32
    %c0_i32_0 = arith.constant 0 : i32
    %c0_i32_1 = arith.constant 0 : i32
    return %c0_i32, %c0_i32_0 : i32, i32
  }
  func.func @transform_5(%arg0: i32, %arg1: i32) -> (i32, i32) {
    %c0_i32 = arith.constant 0 : i32
    %c0_i32_0 = arith.constant 0 : i32
    return %arg0, %c0_i32 : i32, i32
  }
}

</mosaic_0001>

<bundles_post_ra>
// kernel: tpu_custom_call.1
= control target key start
LH: loop header
LB: loop body
LE: loop exit
PB: predicated region body
PF: predicated region fallthrough
CT: control target
= control target key end

     0   :  { %10 = vsyncpa [#allocation3], 0  ;;  %s652_s0 = inlined_call_operand.hbm [shape: f32[16,128], index: 0, kind: input, shape index: {}]   ;;  %s653_s1 = inlined_call_operand.hbm [shape: f32[128,256], index: 1, kind: input, shape index: {}]   ;;  %s654_s2 = inlined_call_operand.vmem [shape: f32[1,256], index: 2, kind: input, shape index: {}]   ;;  %s655_s3 = inlined_call_operand.hbm [shape: f32[256,128], index: 3, kind: input, shape index: {}]   ;;  %s656_s4 = inlined_call_operand.vmem [shape: f32[1,128], index: 4, kind: input, shape index: {}]   ;;  %s657_s5 = inlined_call_operand.hbm [shape: f32[16,128], index: 5, kind: output, shape index: {}]  }
   0x1   :  { %11 = vsyncpa [#allocation6], 0 }
   0x2   :  { %12 = vsyncpa [#allocation4], 0  ;;  %s548_s18 = smov [#allocation5]   ;;  %s454_s22 = scalar_lea.hbm %s653_s1, 4096 }
   0x3   :  { %s30_s19 = sshll.u32 %s548_s18, 4  ;;  %p455_p0 = scmp.ne.s32.totalorder %s653_s1, %s454_s22  ;;  %s31_s19 = int_to_ptr.vmem [resolvable:$true] %s30_s19 }
   0x4   :  { %p458_p1 = scmp.lt.u32.totalorder %s454_s22, %s653_s1 }
   0x6   :  { %p460_p2 = pnand %p458_p1, %p455_p0 }
   0x8   :  { %463 = shalt.err (!%p460_p2)
}
   0x9   :  { %s464_s27 = scalar_lea.vmem %s31_s19, 4096  ;;  %p469_p4 = scmp.lt.s32.totalorder %s31_s19, %s31_s19 }
   0xa   :  { %p465_p3 = scmp.ne.s32.totalorder %s31_s19, %s464_s27  ;;  %p470_p5 = scmp.lt.s32.totalorder %s464_s27, %s464_s27 }
   0xc   :  { %p471_p6 = por %p470_p5, %p469_p4 }
   0xe   :  { %p472_p7 = pnand %p471_p6, %p465_p3 }
  0x10   :  { %475 = shalt.err (!%p472_p7)
}
  0x11   :  { %s549_s28 = smov 256   ;;  %s550_s29 = smov 16  }
  0x12   :  { %36 = dma.hbm_to_vmem [thread:$0]  %s653_s1, 4096, %s31_s19, [#allocation6], %s549_s28, %s549_s28, %s550_s29  }
  0x13   :  { %s551_s7 = smov [#allocation2]   ;;  %s476_s11 = scalar_lea.hbm %s652_s0, 256 }
  0x14   :  { %s18_s8 = sshll.u32 %s551_s7, 4  ;;  %p477_p8 = scmp.ne.s32.totalorder %s652_s0, %s476_s11  ;;  %s19_s8 = int_to_ptr.vmem [resolvable:$true] %s18_s8 }
  0x15   :  { %p480_p9 = scmp.lt.u32.totalorder %s476_s11, %s652_s0 }
  0x17   :  { %p482_p10 = pnand %p480_p9, %p477_p8 }
  0x19   :  { %485 = shalt.err (!%p482_p10)
}
  0x1a   :  { %s486_s16 = scalar_lea.vmem %s19_s8, 256  ;;  %p491_p12 = scmp.lt.s32.totalorder %s19_s8, %s19_s8 }
  0x1b   :  { %p487_p11 = scmp.ne.s32.totalorder %s19_s8, %s486_s16  ;;  %p492_p13 = scmp.lt.s32.totalorder %s486_s16, %s486_s16 }
  0x1d   :  { %p493_p0 = por %p492_p13, %p491_p12 }
  0x1f   :  { %p494_p1 = pnand %p493_p0, %p487_p11 }
  0x21   :  { %497 = shalt.err (!%p494_p1)
}
  0x22   :  { %s552_s1 = smov 128   ;;  %s553_s17 = smov 8  }
  0x23   :  { %24 = dma.hbm_to_vmem [thread:$0]  %s652_s0, 256, %s19_s8, [#allocation3], %s552_s1, %s552_s1, %s553_s17  }
  0x24   :  { %s554_s20 = smov [#allocation7]   ;;  %s498_s24 = scalar_lea.hbm %s655_s3, 4096 }
  0x25   :  { %s44_s21 = sshll.u32 %s554_s20, 4  ;;  %p499_p2 = scmp.ne.s32.totalorder %s655_s3, %s498_s24  ;;  %s45_s21 = int_to_ptr.vmem [resolvable:$true] %s44_s21 }
  0x26   :  { %p502_p3 = scmp.lt.u32.totalorder %s498_s24, %s655_s3 }
  0x28   :  { %p504_p4 = pnand %p502_p3, %p499_p2 }
  0x2a   :  { %507 = shalt.err (!%p504_p4)
}
  0x2b   :  { %s508_s29 = scalar_lea.vmem %s45_s21, 4096  ;;  %p513_p6 = scmp.lt.s32.totalorder %s45_s21, %s45_s21 }
  0x2c   :  { %p509_p5 = scmp.ne.s32.totalorder %s45_s21, %s508_s29  ;;  %p514_p7 = scmp.lt.s32.totalorder %s508_s29, %s508_s29 }
  0x2e   :  { %p515_p8 = por %p514_p7, %p513_p6 }
  0x30   :  { %p516_p9 = pnand %p515_p8, %p509_p5 }
  0x32   :  { %519 = shalt.err (!%p516_p9)
}
  0x33   :  { %50 = dma.hbm_to_vmem [thread:$0]  %s655_s3, 4096, %s45_s21, [#allocation6], %s552_s1, %s552_s1, %s553_s17  }
  0x34   :  { %542 = dma.done.wait [#allocation3], 256  }
  0x35   :  { %543 = vsyncadd [#allocation3], 4294967040 }
  0x36   :  { %544 = dma.done.wait [#allocation6], 8192  }
  0x37   :  { %545 = vsyncadd [#allocation6], 4294959104  ;;  %v555_v0 = vmov 0.0   ;;  %v71_v1 = vld [vmem:[#allocation5 + $0x8] sm:$0xff]  ;;  %v73_v2 = vld [vmem:[#allocation5 + $0x18] sm:$0xff]  ;;  %s556_s8 = smov [#allocation8]  }
  0x38   :  { %178 = vmatprep.mubr.f32.mxu0 %v555_v0  ;;  %v70_v3 = vld [vmem:[#allocation5] sm:$0xff]  ;;  %v381_v4 = vpack.c.bf16 %v73_v2, %v71_v1  ;;  %v72_v5 = vld [vmem:[#allocation5 + $0x10] sm:$0xff]  ;;  %v75_v6 = vld [vmem:[#allocation5 + $0x28] sm:$0xff]  ;;  %s329_s9 = sshll.u32 %s556_s8, 4  ;;  %s330_s9 = int_to_ptr.vmem [resolvable:$true] %s329_s9 }
  0x39   :  { %v77_v7 = vld [vmem:[#allocation5 + $0x38] sm:$0xff]  ;;  %v383_v8 = vpack.c.bf16 %v72_v5, %v70_v3  ;;  %v74_v10 = vld [vmem:[#allocation5 + $0x20] sm:$0xff]  ;;  %v76_v11 = vld [vmem:[#allocation5 + $0x30] sm:$0xff]  ;;  %s520_s10 = scalar_lea.vmem %s330_s9, 256  ;;  %p525_p11 = scmp.lt.s32.totalorder %s330_s9, %s330_s9 }
  0x3a   :  { %v385_v9 = vpack.c.bf16 %v77_v7, %v75_v6  ;;  %v79_v12 = vld [vmem:[#allocation5 + $0x48] sm:$0xff]  ;;  %382 = vmatprep.subr.bf16.mxu0 %v381_v4  ;;  %v81_v13 = vld [vmem:[#allocation5 + $0x58] sm:$0xff]  ;;  %v387_v14 = vpack.c.bf16 %v76_v11, %v74_v10  ;;  %v78_v16 = vld [vmem:[#allocation5 + $0x40] sm:$0xff]  ;;  %p521_p10 = scmp.ne.s32.totalorder %s330_s9, %s520_s10  ;;  %p526_p12 = scmp.lt.s32.totalorder %s520_s10, %s520_s10 }
  0x3b   :  { %384 = vmatpush1.bf16.msra.mxu0 %v383_v8  ;;  %v389_v15 = vpack.c.bf16 %v81_v13, %v79_v12  ;;  %v80_v17 = vld [vmem:[#allocation5 + $0x50] sm:$0xff]  ;;  %v83_v18 = vld [vmem:[#allocation5 + $0x68] sm:$0xff]  ;;  %v85_v19 = vld [vmem:[#allocation5 + $0x78] sm:$0xff] }
  0x3c   :  { %386 = vmatprep.subr.bf16.mxu0 %v385_v9  ;;  %v391_v20 = vpack.c.bf16 %v80_v17, %v78_v16  ;;  %v393_v21 = vpack.c.bf16 %v85_v19, %v83_v18  ;;  %v82_v22 = vld [vmem:[#allocation5 + $0x60] sm:$0xff]  ;;  %v84_v23 = vld [vmem:[#allocation5 + $0x70] sm:$0xff]  ;;  %v87_v24 = vld [vmem:[#allocation5 + $0x88] sm:$0xff]  ;;  %p527_p13 = por %p526_p12, %p525_p11 }
  0x3d   :  { %v89_v25 = vld [vmem:[#allocation5 + $0x98] sm:$0xff]  ;;  %v86_v26 = vld [vmem:[#allocation5 + $0x80] sm:$0xff]  ;;  %v88_v27 = vld [vmem:[#allocation5 + $0x90] sm:$0xff]  ;;  %v395_v30 = vpack.c.bf16 %v84_v23, %v82_v22 }
  0x3e   :  { %v213_v28 = vld [vmem:[#allocation7 + $0x80] sm:$0xff]  ;;  %v214_v29 = vld [vmem:[#allocation7 + $0x88] sm:$0xff]  ;;  %v215_v35 = vld [vmem:[#allocation7 + $0x90] sm:$0xff]  ;;  %v397_v36 = vpack.c.bf16 %v89_v25, %v87_v24  ;;  %v399_v46 = vpack.c.bf16 %v88_v27, %v86_v26  ;;  %p528_p0 = pnand %p527_p13, %p521_p10 }
  0x3f   :  { %388 = vmatpush1.bf16.msra.mxu0 %v387_v14  ;;  %v91_v31 = vld [vmem:[#allocation5 + $0xa8] sm:$0xff]  ;;  %v413_v32 = vpack.c.bf16 %v214_v29, %v213_v28  ;;  %v197_v33 = vld [vmem:[#allocation7] sm:$0xff]  ;;  %v216_v38 = vld [vmem:[#allocation7 + $0x98] sm:$0xff] }
  0x40   :  { %390 = vmatprep.subr.bf16.mxu0 %v389_v15  ;;  %v198_v34 = vld [vmem:[#allocation7 + $0x8] sm:$0xff]  ;;  %v199_v39 = vld [vmem:[#allocation7 + $0x10] sm:$0xff]  ;;  %v200_v40 = vld [vmem:[#allocation7 + $0x18] sm:$0xff]  ;;  %v417_v42 = vpack.c.bf16 %v216_v38, %v215_v35 }
  0x41   :  { %v415_v37 = vpack.c.bf16 %v198_v34, %v197_v33  ;;  %v93_v41 = vld [vmem:[#allocation5 + $0xb8] sm:$0xff]  ;;  %414 = vmatprep.subr.bf16.mxu1 %v413_v32  ;;  %v217_v43 = vld [vmem:[#allocation7 + $0xa0] sm:$0xff]  ;;  %v218_v44 = vld [vmem:[#allocation7 + $0xa8] sm:$0xff]  ;;  %v419_v45 = vpack.c.bf16 %v200_v40, %v199_v39 }
  0x42   :  { %v90_v47 = vld [vmem:[#allocation5 + $0xa0] sm:$0xff]  ;;  %v421_v48 = vpack.c.bf16 %v218_v44, %v217_v43  ;;  %v202_v50 = vld [vmem:[#allocation7 + $0x28] sm:$0xff]  ;;  %v401_v51 = vpack.c.bf16 %v93_v41, %v91_v31  ;;  %v92_v52 = vld [vmem:[#allocation5 + $0xb0] sm:$0xff] }
  0x43   :  { %392 = vmatpush1.bf16.msra.mxu0 %v391_v20  ;;  %416 = vmatpush3.bf16.msra.mxu1 %v415_v37  ;;  %v201_v49 = vld [vmem:[#allocation7 + $0x20] sm:$0xff]  ;;  %v219_v53 = vld [vmem:[#allocation7 + $0xb0] sm:$0xff]  ;;  %v220_v54 = vld [vmem:[#allocation7 + $0xb8] sm:$0xff]  ;;  %v403_v58 = vpack.c.bf16 %v92_v52, %v90_v47 }
  0x44   :  { %394 = vmatprep.subr.bf16.mxu0 %v393_v21  ;;  %418 = vmatprep.subr.bf16.mxu1 %v417_v42  ;;  %v95_v55 = vld [vmem:[#allocation5 + $0xc8] sm:$0xff]  ;;  %v97_v56 = vld [vmem:[#allocation5 + $0xd8] sm:$0xff]  ;;  %v423_v57 = vpack.c.bf16 %v202_v50, %v201_v49  ;;  %v94_v59 = vld [vmem:[#allocation5 + $0xc0] sm:$0xff]  ;;  %v425_v60 = vpack.c.bf16 %v220_v54, %v219_v53 }
  0x45   :  { %v203_v61 = vld [vmem:[#allocation7 + $0x30] sm:$0xff]  ;;  %v204_v62 = vld [vmem:[#allocation7 + $0x38] sm:$0xff]  ;;  %v405_v63 = vpack.c.bf16 %v97_v56, %v95_v55  ;;  %v221_v2 = vld [vmem:[#allocation7 + $0xc0] sm:$0xff] }
  0x46   :  { %v96_v1 = vld [vmem:[#allocation5 + $0xd0] sm:$0xff]  ;;  %v222_v3 = vld [vmem:[#allocation7 + $0xc8] sm:$0xff]  ;;  %v101_v5 = vld [vmem:[#allocation5 + $0xf8] sm:$0xff]  ;;  %v427_v6 = vpack.c.bf16 %v204_v62, %v203_v61 }
  0x47   :  { %396 = vmatpush1.bf16.msra.mxu0 %v395_v30  ;;  %420 = vmatpush3.bf16.msra.mxu1 %v419_v45  ;;  %v99_v4 = vld [vmem:[#allocation5 + $0xe8] sm:$0xff]  ;;  %v407_v7 = vpack.c.bf16 %v96_v1, %v94_v59  ;;  %v98_v8 = vld [vmem:[#allocation5 + $0xe0] sm:$0xff]  ;;  %v429_v9 = vpack.c.bf16 %v222_v3, %v221_v2  ;;  %v100_v13 = vld [vmem:[#allocation5 + $0xf0] sm:$0xff] }
  0x48   :  { %398 = vmatprep.subr.bf16.mxu0 %v397_v36  ;;  %422 = vmatprep.subr.bf16.mxu1 %v421_v48  ;;  %v205_v10 = vld [vmem:[#allocation7 + $0x40] sm:$0xff]  ;;  %v206_v11 = vld [vmem:[#allocation7 + $0x48] sm:$0xff]  ;;  %v409_v12 = vpack.c.bf16 %v101_v5, %v99_v4  ;;  %v223_v14 = vld [vmem:[#allocation7 + $0xd0] sm:$0xff]  ;;  %v411_v17 = vpack.c.bf16 %v100_v13, %v98_v8  ;;  %v104_v36 = vlaneseq }
  0x49   :  { %v224_v15 = vld [vmem:[#allocation7 + $0xd8] sm:$0xff]  ;;  %v431_v16 = vpack.c.bf16 %v206_v11, %v205_v10  ;;  %v207_v19 = vld [vmem:[#allocation7 + $0x50] sm:$0xff]  ;;  %v225_v21 = vld [vmem:[#allocation7 + $0xe0] sm:$0xff] }
  0x4a   :  { %v433_v18 = vpack.c.bf16 %v224_v15, %v223_v14  ;;  %v208_v20 = vld [vmem:[#allocation7 + $0x58] sm:$0xff]  ;;  %v226_v22 = vld [vmem:[#allocation7 + $0xe8] sm:$0xff]  ;;  %v68_v24 = vld [vmem:[#allocation2] sm:$0xff]  ;;  %v105_v37 = vshrl.u32 %v104_v36, 7 }
  0x4b   :  { %400 = vmatpush1.bf16.msra.mxu0 %v399_v46  ;;  %424 = vmatpush3.bf16.msra.mxu1 %v423_v57  ;;  %v435_v23 = vpack.c.bf16 %v208_v20, %v207_v19  ;;  %v437_v25 = vpack.c.bf16 %v226_v22, %v225_v21  ;;  %v69_v26 = vld [vmem:[#allocation2 + $0x8] sm:$0xff]  ;;  %v209_v27 = vld [vmem:[#allocation7 + $0x60] sm:$0xff]  ;;  %v210_v28 = vld [vmem:[#allocation7 + $0x68] sm:$0xff] }
  0x4c   :  { %402 = vmatprep.subr.bf16.mxu0 %v401_v51  ;;  %426 = vmatprep.subr.bf16.mxu1 %v425_v60  ;;  %v439_v29 = vpack.c.bf16 %v210_v28, %v209_v27  ;;  %v227_v30 = vld [vmem:[#allocation7 + $0xf0] sm:$0xff]  ;;  %v228_v31 = vld [vmem:[#allocation7 + $0xf8] sm:$0xff]  ;;  %v106_v38 = vsub.s32 0, %v105_v37  ;;  %v110_v39 = vsub.s32 1, %v105_v37 }
  0x4d   :  { %v441_v32 = vpack.c.bf16 %v228_v31, %v227_v30  ;;  %v211_v33 = vld [vmem:[#allocation7 + $0x70] sm:$0xff]  ;;  %v212_v34 = vld [vmem:[#allocation7 + $0x78] sm:$0xff] }
  0x4e   :  { %v443_v35 = vpack.c.bf16 %v212_v34, %v211_v33  ;;  %v342_v57 = vld [vmem:[%s656_s4] ss:$0 sm:$0xff] }
  0x4f   :  { %404 = vmatpush1.bf16.msra.mxu0 %v403_v58  ;;  %428 = vmatpush3.bf16.msra.mxu1 %v427_v6 }
  0x50   :  { %406 = vmatprep.subr.bf16.mxu0 %v405_v63  ;;  %430 = vmatprep.subr.bf16.mxu1 %v429_v9 }
  0x53   :  { %408 = vmatpush1.bf16.msra.mxu0 %v407_v7  ;;  %432 = vmatpush3.bf16.msra.mxu1 %v431_v16 }
  0x54   :  { %410 = vmatprep.subr.bf16.mxu0 %v409_v12  ;;  %434 = vmatprep.subr.bf16.mxu1 %v433_v18 }
  0x57   :  { %412 = vmatpush1.bf16.msra.mxu0 %v411_v17  ;;  %436 = vmatpush3.bf16.msra.mxu1 %v435_v23 }
  0x58   :  { %438 = vmatprep.subr.bf16.mxu1 %v437_v25 }
  0x5a   :  { %179 = vmatmul.mubr.f32.vlgmr.msra.gmra.mrb[0].mxu0 %v68_v24 }
  0x5b   :  { %184 = vmatprep.mubr.f32.mxu0 %v555_v0  ;;  %440 = vmatpush3.bf16.msra.mxu1 %v439_v29  ;;  %v102_v0 = vld [vmem:[%s654_s2] sm:$0x3] }
  0x5c   :  { %442 = vmatprep.subr.bf16.mxu1 %v441_v32  ;;  %v107_v40 = vrot.slane %v102_v0, %v106_v38  ;;  %v111_v41 = vrot.slane %v102_v0, %v110_v39 }
  0x5e   :  { %185 = vmatmul.mubr.f32.gmra.mrb[2].mxu0 %v69_v26 }
  0x5f   :  { %444 = vmatpush3.bf16.msra.mxu1 %v443_v35 }
 0x12d   :  { %v180_v42 = vpop.f32.mrb[0].mxu0 }
 0x12e   :  { %v181_v43 = vadd.f32 %v180_v42, %v107_v40  ;;  %v182_v44 = vpop.f32.mrb[1].mxu0 }
 0x12f   :  { %v183_v45 = vadd.f32 %v182_v44, %v111_v41 }
 0x130   :  { %v191_v48 = vmax.f32 %v181_v43, 0.0 }
 0x131   :  { %v186_v46 = vpop.f32.mrb[2].mxu0  ;;  %v192_v47 = vmax.f32 %v183_v45, 0.0 }
 0x132   :  { %v187_v49 = vadd.f32 %v186_v46, %v107_v40  ;;  %v188_v50 = vpop.f32.mrb[3].mxu0 }
 0x133   :  { %v189_v51 = vadd.f32 %v188_v50, %v111_v41  ;;  %293 = vmatprep.mubr.f32.mxu1 %v192_v47 }
 0x134   :  { %294 = vmatmul.mubr.f32.vlgmr.msra.gmra.mrb[0].mxu1 %v191_v48  ;;  %v193_v53 = vmax.f32 %v187_v49, 0.0 }
 0x135   :  { %v194_v52 = vmax.f32 %v189_v51, 0.0 }
 0x137   :  { %298 = vmatprep.mubr.f32.mxu1 %v194_v52 }
 0x138   :  { %299 = vmatmul.mubr.f32.gmra.mrb[2].mxu1 %v193_v53 }
 0x207   :  { %v375_v54 = vpop.f32.mrb[0].mxu1 }
 0x208   :  { %v376_v55 = vpop.f32.mrb[1].mxu1 }
 0x209   :  { %v377_v56 = vadd.f32 %v376_v55, %v375_v54 }
 0x20b   :  { %v378_v58 = vpop.f32.mrb[2].mxu1  ;;  %v320_v61 = vadd.f32 %v377_v56, %v342_v57 }
 0x20c   :  { %v379_v59 = vpop.f32.mrb[3].mxu1 }
 0x20d   :  { %v380_v60 = vadd.f32 %v379_v59, %v378_v58  ;;  %322 = vst [vmem:[#allocation8] sm:$0xff] %v320_v61 }
 0x20f   :  { %v321_v62 = vadd.f32 %v380_v60, %v342_v57 }
 0x211   :  { %323 = vst [vmem:[#allocation8 + $0x8] sm:$0xff] %v321_v62 }
 0x212   :  { %531 = shalt.err (!%p528_p0)
}
 0x213   :  { %s532_s4 = scalar_lea.hbm %s657_s5, 256 }
 0x214   :  { %p533_p1 = scmp.ne.s32.totalorder %s657_s5, %s532_s4  ;;  %p536_p2 = scmp.lt.u32.totalorder %s532_s4, %s657_s5 }
 0x216   :  { %p538_p3 = pnand %p536_p2, %p533_p1 }
 0x218   :  { %541 = shalt.err (!%p538_p3)
}
 0x219   :  { %335 = dma.vmem_to_hbm [thread:$0]  %s330_s9, 256, %s657_s5, [#allocation4], %s552_s1, %s552_s1, %s553_s17  }
 0x21a   :  { %546 = dma.done.wait [#allocation4], 256  }
 0x21b   :  { %547 = vsyncadd [#allocation4], 4294967040 }
 0x21c   :  { %339 = vsyncpa [#allocation3], 1 }
 0x21d   :  { %340 = vsyncpa [#allocation6], 1 }
 0x21e   :  { %341 = vsyncpa [#allocation4], 1 }

</bundles_post_ra>
